<compile_context>
chip_gen: v7x
topology: tpu7x:2x2x1
jax: 0.10.0
libtpu: 0.0.40
codegen_flags: <defaults>
</compile_context>

<pallas_src>
import jax
import jax.numpy as jnp
from jax.experimental import pallas as pl
from jax.experimental.pallas import tpu as pltpu

EPS = 1e-5
D_PAD = 128  # lane-padded head width (real head width is 14)


def _bn_train(x, gamma, beta):
    """BatchNorm1d, training-mode statistics, applied as x*scale + shift.

    var = E[x^2] - E[x]^2 so the two sublane (XLU) reductions are independent,
    and no (x - mean) broadcast is needed; rsqrt goes to the EUP slot.
    """
    inv_n = 1.0 / x.shape[0]
    mean = jnp.sum(x, axis=0, keepdims=True) * inv_n
    ex2 = jnp.sum(x * x, axis=0, keepdims=True) * inv_n
    var = ex2 - mean * mean                      # biased batch variance
    scale = gamma * jax.lax.rsqrt(var + EPS)
    shift = beta - mean * scale
    return x * scale + shift


def simsiam_forward(x0, x1, param_slab, *, num_ftrs=64, out_dim=14, d_pad=D_PAD):
    """Pallas implementation of SimSiam.forward (backbone treated as identity).

    param_slab is the single (num_ftrs + 3*d_pad + 8, d_pad) slab from pack_params.
    Returns ((z0, p0), (z1, p1)) with the original [B, out_dim] shapes.
    """
    # TODO(synk): backbone is an arbitrary user-supplied nn.Module in the original
    # code; x0/x1 here are the already-extracted [B, num_ftrs] features.
    # TODO(synk): forward-only (training-mode batch-norm stats); eval-mode running
    # stats and the .detach() backward semantics need a custom_vjp / backward kernel.
    B = x0.shape[0]
    r_w1 = 0
    r_w2 = num_ftrs
    r_w3 = num_ftrs + d_pad
    r_w4 = num_ftrs + 2 * d_pad
    r_vec = num_ftrs + 3 * d_pad

    def kernel(x0_ref, x1_ref, p_ref, out_ref):
        # ---- unpack parameters from the single VMEM slab (8-aligned row slices) ----
        w1 = p_ref[r_w1:r_w1 + num_ftrs, :]     # (F, 128)
        w2 = p_ref[r_w2:r_w2 + d_pad, :]        # (128, 128)
        w3 = p_ref[r_w3:r_w3 + d_pad, :]        # (128, 128)
        w4 = p_ref[r_w4:r_w4 + d_pad, :]        # (128, 128)
        vecs = p_ref[r_vec:r_vec + 8, :]        # (8, 128): g1,b1,g2,b2,g3,b3,b4,pad
        g1, b1 = vecs[0:1], vecs[1:2]
        g2, b2 = vecs[2:3], vecs[3:4]
        g3, b3 = vecs[4:5], vecs[5:6]
        b4 = vecs[6:7]

        def heads(f):
            # projection: Linear(no bias) -> BN -> ReLU ; Linear(no bias) -> BN
            h = jnp.dot(f, w1, preferred_element_type=jnp.float32)
            h = jnp.maximum(_bn_train(h, g1, b1), 0.0)
            z = _bn_train(jnp.dot(h, w2, preferred_element_type=jnp.float32), g2, b2)
            # prediction: Linear(no bias) -> BN -> ReLU ; Linear(bias)
            q = jnp.dot(z, w3, preferred_element_type=jnp.float32)
            q = jnp.maximum(_bn_train(q, g3, b3), 0.0)
            p = jnp.dot(q, w4, preferred_element_type=jnp.float32) + b4
            return z, p

        # Two independent chains traced in one body -> interleaved VLIW schedule.
        z0, p0 = heads(x0_ref[...])
        z1, p1 = heads(x1_ref[...])

        # One lane-dense (4B, 128) output slab: rows z0 | p0 | z1 | p1.
        out_ref[0 * B:1 * B, :] = z0
        out_ref[1 * B:2 * B, :] = p0
        out_ref[2 * B:3 * B, :] = z1
        out_ref[3 * B:4 * B, :] = p1

    vmem = pl.BlockSpec(memory_space=pltpu.MemorySpace.VMEM)  # whole array in VMEM
    out = pl.pallas_call(
        kernel,
        out_shape=jax.ShapeDtypeStruct((4 * B, d_pad), jnp.float32),
        in_specs=[vmem, vmem, vmem],
        out_specs=vmem,
    )(x0, x1, param_slab)

    # .detach() in PyTorch -> stop_gradient (forward values identical).
    z0 = jax.lax.stop_gradient(out[0 * B:1 * B, :out_dim])
    p0 = out[1 * B:2 * B, :out_dim]
    z1 = jax.lax.stop_gradient(out[2 * B:3 * B, :out_dim])
    p1 = out[3 * B:4 * B, :out_dim]
    return (z0, p0), (z1, p1)


# ---------------------------------------------------------------------------
# Parameter handling
# ---------------------------------------------------------------------------

def pack_params(params, d_pad=D_PAD):
    """Pack all 11 parameter arrays into ONE lane-padded, 8-row-aligned slab.

    Rows: [0:F)=w1, [F:F+128)=w2, [F+128:F+256)=w3, [F+256:F+384)=w4,
          [F+384:F+392)= g1,b1,g2,b2,g3,b3,b4,0.  Lanes >= out_dim are zero,
    which keeps every padded lane of every intermediate exactly zero.
    """
    d = params["w2"].shape[1]
    f_in = params["w1"].shape[0]

    def pad(a, rows):
        return jnp.zeros((rows, d_pad), jnp.float32).at[: a.shape[0], : a.shape[1]].set(a)

    w1 = pad(params["w1"], f_in)
    w2 = pad(params["w2"], d_pad)
    w3 = pad(params["w3"], d_pad)
    w4 = pad(params["w4"], d_pad)
    vec = jnp.concatenate(
        [params["g1"], params["b1"], params["g2"], params["b2"],
         params["g3"], params["b3"], params["b4"]], axis=0)          # (7, d)
    vecs = jnp.zeros((8, d_pad), jnp.float32).at[:7, :d].set(vec)
    return jnp.concatenate([w1, w2, w3, w4, vecs], axis=0)           # (F+3*128+8, 128)


def init_params(key, num_ftrs=64, proj_hidden_dim=14, pred_hidden_dim=14, out_dim=14):
    ks = jax.random.split(key, 5)

    def lin(k, fan_in, fan_out):
        # PyTorch-style uniform(-1/sqrt(fan_in), 1/sqrt(fan_in)),
        # stored as [in, out] so the kernel does f @ W (== f @ W_pt.T).
        bound = 1.0 / jnp.sqrt(jnp.float32(fan_in))
        return jax.random.uniform(k, (fan_in, fan_out), jnp.float32, -bound, bound)

    b4_bound = 1.0 / jnp.sqrt(jnp.float32(pred_hidden_dim))
    return {
        # projection head
        "w1": lin(ks[0], num_ftrs, proj_hidden_dim),
        "g1": jnp.ones((1, proj_hidden_dim), jnp.float32),
        "b1": jnp.zeros((1, proj_hidden_dim), jnp.float32),
        "w2": lin(ks[1], proj_hidden_dim, out_dim),
        "g2": jnp.ones((1, out_dim), jnp.float32),
        "b2": jnp.zeros((1, out_dim), jnp.float32),
        # prediction head
        "w3": lin(ks[2], out_dim, pred_hidden_dim),
        "g3": jnp.ones((1, pred_hidden_dim), jnp.float32),
        "b3": jnp.zeros((1, pred_hidden_dim), jnp.float32),
        "w4": lin(ks[3], pred_hidden_dim, out_dim),
        "b4": jax.random.uniform(ks[4], (1, out_dim), jnp.float32, -b4_bound, b4_bound),
    }


def reference_forward(x0, x1, params):
    """Pure-JAX reference with PyTorch BatchNorm1d training-mode semantics."""
    def bn(x, gamma, beta):
        mean = jnp.mean(x, axis=0, keepdims=True)
        var = jnp.mean((x - mean) ** 2, axis=0, keepdims=True)   # biased variance
        return gamma * (x - mean) * jax.lax.rsqrt(var + EPS) + beta

    def heads(f):
        h = jnp.maximum(bn(f @ params["w1"], params["g1"], params["b1"]), 0.0)
        z = bn(h @ params["w2"], params["g2"], params["b2"])
        q = jnp.maximum(bn(z @ params["w3"], params["g3"], params["b3"]), 0.0)
        p = q @ params["w4"] + params["b4"]
        return z, p

    z0, p0 = heads(x0)
    z1, p1 = heads(x1)
    return (z0, p0), (z1, p1)


if __name__ == "__main__":
    key = jax.random.PRNGKey(0)
    kx0, kx1, kp = jax.random.split(key, 3)

    B, NUM_FTRS, OUT_DIM = 8, 64, 14   # B multiple of 8 -> 8-aligned output rows
    x0 = jax.random.normal(kx0, (B, NUM_FTRS), jnp.float32)
    x1 = jax.random.normal(kx1, (B, NUM_FTRS), jnp.float32)
    params = init_params(kp, num_ftrs=NUM_FTRS, out_dim=OUT_DIM)
    param_slab = pack_params(params)   # one-time packing into a single (456, 128) slab

    fwd = jax.jit(lambda a, b, p: simsiam_forward(a, b, p,
                                                  num_ftrs=NUM_FTRS, out_dim=OUT_DIM))
    (z0, p0), (z1, p1) = fwd(x0, x1, param_slab)
    jax.block_until_ready((z0, p0, z1, p1))

    (rz0, rp0), (rz1, rp1) = reference_forward(x0, x1, params)
    for got, want in [(z0, rz0), (p0, rp0), (z1, rz1), (p1, rp1)]:
        assert got.shape == want.shape, (got.shape, want.shape)
        assert jnp.allclose(got, want, atol=1e-4, rtol=1e-4), "mismatch vs reference"

    print("KERNEL_OK")
</pallas_src>

<mosaic_0001>
module attributes {stable_mosaic.version = 11 : i64} {
  func.func @kernel(%arg0: memref<8x64xf32, #tpu.memory_space<vmem>>, %arg1: memref<8x64xf32, #tpu.memory_space<vmem>>, %arg2: memref<456x128xf32, #tpu.memory_space<vmem>>, %arg3: memref<32x128xf32, #tpu.memory_space<vmem>>) attributes {dimension_semantics = [], scalar_prefetch = 0 : i64, scratch_operands = 0 : i64, tpu.core_type = #tpu.core_type<tc>} {
    %c0 = arith.constant 0 : index
    %c0_0 = arith.constant 0 : index
    %0 = vector.load %arg2[%c0, %c0_0] : memref<456x128xf32, #tpu.memory_space<vmem>>, vector<64x128xf32>
    %c64 = arith.constant 64 : index
    %c0_1 = arith.constant 0 : index
    %1 = vector.load %arg2[%c64, %c0_1] : memref<456x128xf32, #tpu.memory_space<vmem>>, vector<128x128xf32>
    %c192 = arith.constant 192 : index
    %c0_2 = arith.constant 0 : index
    %2 = vector.load %arg2[%c192, %c0_2] : memref<456x128xf32, #tpu.memory_space<vmem>>, vector<128x128xf32>
    %c320 = arith.constant 320 : index
    %c0_3 = arith.constant 0 : index
    %3 = vector.load %arg2[%c320, %c0_3] : memref<456x128xf32, #tpu.memory_space<vmem>>, vector<128x128xf32>
    %c448 = arith.constant 448 : index
    %c0_4 = arith.constant 0 : index
    %4 = vector.load %arg2[%c448, %c0_4] : memref<456x128xf32, #tpu.memory_space<vmem>>, vector<8x128xf32>
    %5 = vector.extract_strided_slice %4 {offsets = [0, 0], sizes = [1, 128], strides = [1, 1]} : vector<8x128xf32> to vector<1x128xf32>
    %6 = vector.extract_strided_slice %4 {offsets = [1, 0], sizes = [1, 128], strides = [1, 1]} : vector<8x128xf32> to vector<1x128xf32>
    %7 = vector.extract_strided_slice %4 {offsets = [2, 0], sizes = [1, 128], strides = [1, 1]} : vector<8x128xf32> to vector<1x128xf32>
    %8 = vector.extract_strided_slice %4 {offsets = [3, 0], sizes = [1, 128], strides = [1, 1]} : vector<8x128xf32> to vector<1x128xf32>
    %9 = vector.extract_strided_slice %4 {offsets = [4, 0], sizes = [1, 128], strides = [1, 1]} : vector<8x128xf32> to vector<1x128xf32>
    %10 = vector.extract_strided_slice %4 {offsets = [5, 0], sizes = [1, 128], strides = [1, 1]} : vector<8x128xf32> to vector<1x128xf32>
    %11 = vector.extract_strided_slice %4 {offsets = [6, 0], sizes = [1, 128], strides = [1, 1]} : vector<8x128xf32> to vector<1x128xf32>
    %c0_5 = arith.constant 0 : index
    %c0_6 = arith.constant 0 : index
    %12 = vector.load %arg0[%c0_5, %c0_6] : memref<8x64xf32, #tpu.memory_space<vmem>>, vector<8x64xf32>
    %cst = arith.constant dense<0.000000e+00> : vector<8x128xf32>
    %13 = tpu.matmul %12, %0, %cst {dimension_numbers = #tpu.dot_dimension_numbers<[1], [0], [0], [1], [0, 0, 1, 1], [], []>} : vector<8x64xf32>, vector<64x128xf32>, vector<8x128xf32> -> vector<8x128xf32>
    %cst_7 = arith.constant dense<0.000000e+00> : vector<128xf32>
    %14 = vector.multi_reduction <add>, %13, %cst_7 [0] : vector<8x128xf32> to vector<128xf32>
    %15 = vector.shape_cast %14 : vector<128xf32> to vector<1x128xf32>
    %cst_8 = arith.constant 1.250000e-01 : f32
    %16 = vector.broadcast %cst_8 : f32 to vector<1x128xf32>
    %17 = arith.mulf %15, %16 : vector<1x128xf32>
    %18 = arith.mulf %13, %13 : vector<8x128xf32>
    %cst_9 = arith.constant dense<0.000000e+00> : vector<128xf32>
    %19 = vector.multi_reduction <add>, %18, %cst_9 [0] : vector<8x128xf32> to vector<128xf32>
    %20 = vector.shape_cast %19 : vector<128xf32> to vector<1x128xf32>
    %cst_10 = arith.constant 1.250000e-01 : f32
    %21 = vector.broadcast %cst_10 : f32 to vector<1x128xf32>
    %22 = arith.mulf %20, %21 : vector<1x128xf32>
    %23 = arith.mulf %17, %17 : vector<1x128xf32>
    %24 = arith.subf %22, %23 : vector<1x128xf32>
    %cst_11 = arith.constant 9.99999974E-6 : f32
    %25 = vector.broadcast %cst_11 : f32 to vector<1x128xf32>
    %26 = arith.addf %24, %25 : vector<1x128xf32>
    %27 = math.rsqrt %26 : vector<1x128xf32>
    %28 = arith.mulf %5, %27 : vector<1x128xf32>
    %29 = arith.mulf %17, %28 : vector<1x128xf32>
    %30 = arith.subf %6, %29 : vector<1x128xf32>
    %31 = vector.broadcast %28 : vector<1x128xf32> to vector<8x128xf32>
    %32 = arith.mulf %13, %31 : vector<8x128xf32>
    %33 = vector.broadcast %30 : vector<1x128xf32> to vector<8x128xf32>
    %34 = arith.addf %32, %33 : vector<8x128xf32>
    %cst_12 = arith.constant 0.000000e+00 : f32
    %35 = vector.broadcast %cst_12 : f32 to vector<8x128xf32>
    %36 = arith.maximumf %34, %35 : vector<8x128xf32>
    %cst_13 = arith.constant dense<0.000000e+00> : vector<8x128xf32>
    %37 = tpu.matmul %36, %1, %cst_13 {dimension_numbers = #tpu.dot_dimension_numbers<[1], [0], [0], [1], [0, 0, 1, 1], [], []>} : vector<8x128xf32>, vector<128x128xf32>, vector<8x128xf32> -> vector<8x128xf32>
    %cst_14 = arith.constant dense<0.000000e+00> : vector<128xf32>
    %38 = vector.multi_reduction <add>, %37, %cst_14 [0] : vector<8x128xf32> to vector<128xf32>
    %39 = vector.shape_cast %38 : vector<128xf32> to vector<1x128xf32>
    %cst_15 = arith.constant 1.250000e-01 : f32
    %40 = vector.broadcast %cst_15 : f32 to vector<1x128xf32>
    %41 = arith.mulf %39, %40 : vector<1x128xf32>
    %42 = arith.mulf %37, %37 : vector<8x128xf32>
    %cst_16 = arith.constant dense<0.000000e+00> : vector<128xf32>
    %43 = vector.multi_reduction <add>, %42, %cst_16 [0] : vector<8x128xf32> to vector<128xf32>
    %44 = vector.shape_cast %43 : vector<128xf32> to vector<1x128xf32>
    %cst_17 = arith.constant 1.250000e-01 : f32
    %45 = vector.broadcast %cst_17 : f32 to vector<1x128xf32>
    %46 = arith.mulf %44, %45 : vector<1x128xf32>
    %47 = arith.mulf %41, %41 : vector<1x128xf32>
    %48 = arith.subf %46, %47 : vector<1x128xf32>
    %cst_18 = arith.constant 9.99999974E-6 : f32
    %49 = vector.broadcast %cst_18 : f32 to vector<1x128xf32>
    %50 = arith.addf %48, %49 : vector<1x128xf32>
    %51 = math.rsqrt %50 : vector<1x128xf32>
    %52 = arith.mulf %7, %51 : vector<1x128xf32>
    %53 = arith.mulf %41, %52 : vector<1x128xf32>
    %54 = arith.subf %8, %53 : vector<1x128xf32>
    %55 = vector.broadcast %52 : vector<1x128xf32> to vector<8x128xf32>
    %56 = arith.mulf %37, %55 : vector<8x128xf32>
    %57 = vector.broadcast %54 : vector<1x128xf32> to vector<8x128xf32>
    %58 = arith.addf %56, %57 : vector<8x128xf32>
    %cst_19 = arith.constant dense<0.000000e+00> : vector<8x128xf32>
    %59 = tpu.matmul %58, %2, %cst_19 {dimension_numbers = #tpu.dot_dimension_numbers<[1], [0], [0], [1], [0, 0, 1, 1], [], []>} : vector<8x128xf32>, vector<128x128xf32>, vector<8x128xf32> -> vector<8x128xf32>
    %cst_20 = arith.constant dense<0.000000e+00> : vector<128xf32>
    %60 = vector.multi_reduction <add>, %59, %cst_20 [0] : vector<8x128xf32> to vector<128xf32>
    %61 = vector.shape_cast %60 : vector<128xf32> to vector<1x128xf32>
    %cst_21 = arith.constant 1.250000e-01 : f32
    %62 = vector.broadcast %cst_21 : f32 to vector<1x128xf32>
    %63 = arith.mulf %61, %62 : vector<1x128xf32>
    %64 = arith.mulf %59, %59 : vector<8x128xf32>
    %cst_22 = arith.constant dense<0.000000e+00> : vector<128xf32>
    %65 = vector.multi_reduction <add>, %64, %cst_22 [0] : vector<8x128xf32> to vector<128xf32>
    %66 = vector.shape_cast %65 : vector<128xf32> to vector<1x128xf32>
    %cst_23 = arith.constant 1.250000e-01 : f32
    %67 = vector.broadcast %cst_23 : f32 to vector<1x128xf32>
    %68 = arith.mulf %66, %67 : vector<1x128xf32>
    %69 = arith.mulf %63, %63 : vector<1x128xf32>
    %70 = arith.subf %68, %69 : vector<1x128xf32>
    %cst_24 = arith.constant 9.99999974E-6 : f32
    %71 = vector.broadcast %cst_24 : f32 to vector<1x128xf32>
    %72 = arith.addf %70, %71 : vector<1x128xf32>
    %73 = math.rsqrt %72 : vector<1x128xf32>
    %74 = arith.mulf %9, %73 : vector<1x128xf32>
    %75 = arith.mulf %63, %74 : vector<1x128xf32>
    %76 = arith.subf %10, %75 : vector<1x128xf32>
    %77 = vector.broadcast %74 : vector<1x128xf32> to vector<8x128xf32>
    %78 = arith.mulf %59, %77 : vector<8x128xf32>
    %79 = vector.broadcast %76 : vector<1x128xf32> to vector<8x128xf32>
    %80 = arith.addf %78, %79 : vector<8x128xf32>
    %cst_25 = arith.constant 0.000000e+00 : f32
    %81 = vector.broadcast %cst_25 : f32 to vector<8x128xf32>
    %82 = arith.maximumf %80, %81 : vector<8x128xf32>
    %cst_26 = arith.constant dense<0.000000e+00> : vector<8x128xf32>
    %83 = tpu.matmul %82, %3, %cst_26 {dimension_numbers = #tpu.dot_dimension_numbers<[1], [0], [0], [1], [0, 0, 1, 1], [], []>} : vector<8x128xf32>, vector<128x128xf32>, vector<8x128xf32> -> vector<8x128xf32>
    %84 = vector.broadcast %11 : vector<1x128xf32> to vector<8x128xf32>
    %85 = arith.addf %83, %84 : vector<8x128xf32>
    %c0_27 = arith.constant 0 : index
    %c0_28 = arith.constant 0 : index
    %86 = vector.load %arg1[%c0_27, %c0_28] : memref<8x64xf32, #tpu.memory_space<vmem>>, vector<8x64xf32>
    %cst_29 = arith.constant dense<0.000000e+00> : vector<8x128xf32>
    %87 = tpu.matmul %86, %0, %cst_29 {dimension_numbers = #tpu.dot_dimension_numbers<[1], [0], [0], [1], [0, 0, 1, 1], [], []>} : vector<8x64xf32>, vector<64x128xf32>, vector<8x128xf32> -> vector<8x128xf32>
    %cst_30 = arith.constant dense<0.000000e+00> : vector<128xf32>
    %88 = vector.multi_reduction <add>, %87, %cst_30 [0] : vector<8x128xf32> to vector<128xf32>
    %89 = vector.shape_cast %88 : vector<128xf32> to vector<1x128xf32>
    %cst_31 = arith.constant 1.250000e-01 : f32
    %90 = vector.broadcast %cst_31 : f32 to vector<1x128xf32>
    %91 = arith.mulf %89, %90 : vector<1x128xf32>
    %92 = arith.mulf %87, %87 : vector<8x128xf32>
    %cst_32 = arith.constant dense<0.000000e+00> : vector<128xf32>
    %93 = vector.multi_reduction <add>, %92, %cst_32 [0] : vector<8x128xf32> to vector<128xf32>
    %94 = vector.shape_cast %93 : vector<128xf32> to vector<1x128xf32>
    %cst_33 = arith.constant 1.250000e-01 : f32
    %95 = vector.broadcast %cst_33 : f32 to vector<1x128xf32>
    %96 = arith.mulf %94, %95 : vector<1x128xf32>
    %97 = arith.mulf %91, %91 : vector<1x128xf32>
    %98 = arith.subf %96, %97 : vector<1x128xf32>
    %cst_34 = arith.constant 9.99999974E-6 : f32
    %99 = vector.broadcast %cst_34 : f32 to vector<1x128xf32>
    %100 = arith.addf %98, %99 : vector<1x128xf32>
    %101 = math.rsqrt %100 : vector<1x128xf32>
    %102 = arith.mulf %5, %101 : vector<1x128xf32>
    %103 = arith.mulf %91, %102 : vector<1x128xf32>
    %104 = arith.subf %6, %103 : vector<1x128xf32>
    %105 = vector.broadcast %102 : vector<1x128xf32> to vector<8x128xf32>
    %106 = arith.mulf %87, %105 : vector<8x128xf32>
    %107 = vector.broadcast %104 : vector<1x128xf32> to vector<8x128xf32>
    %108 = arith.addf %106, %107 : vector<8x128xf32>
    %cst_35 = arith.constant 0.000000e+00 : f32
    %109 = vector.broadcast %cst_35 : f32 to vector<8x128xf32>
    %110 = arith.maximumf %108, %109 : vector<8x128xf32>
    %cst_36 = arith.constant dense<0.000000e+00> : vector<8x128xf32>
    %111 = tpu.matmul %110, %1, %cst_36 {dimension_numbers = #tpu.dot_dimension_numbers<[1], [0], [0], [1], [0, 0, 1, 1], [], []>} : vector<8x128xf32>, vector<128x128xf32>, vector<8x128xf32> -> vector<8x128xf32>
    %cst_37 = arith.constant dense<0.000000e+00> : vector<128xf32>
    %112 = vector.multi_reduction <add>, %111, %cst_37 [0] : vector<8x128xf32> to vector<128xf32>
    %113 = vector.shape_cast %112 : vector<128xf32> to vector<1x128xf32>
    %cst_38 = arith.constant 1.250000e-01 : f32
    %114 = vector.broadcast %cst_38 : f32 to vector<1x128xf32>
    %115 = arith.mulf %113, %114 : vector<1x128xf32>
    %116 = arith.mulf %111, %111 : vector<8x128xf32>
    %cst_39 = arith.constant dense<0.000000e+00> : vector<128xf32>
    %117 = vector.multi_reduction <add>, %116, %cst_39 [0] : vector<8x128xf32> to vector<128xf32>
    %118 = vector.shape_cast %117 : vector<128xf32> to vector<1x128xf32>
    %cst_40 = arith.constant 1.250000e-01 : f32
    %119 = vector.broadcast %cst_40 : f32 to vector<1x128xf32>
    %120 = arith.mulf %118, %119 : vector<1x128xf32>
    %121 = arith.mulf %115, %115 : vector<1x128xf32>
    %122 = arith.subf %120, %121 : vector<1x128xf32>
    %cst_41 = arith.constant 9.99999974E-6 : f32
    %123 = vector.broadcast %cst_41 : f32 to vector<1x128xf32>
    %124 = arith.addf %122, %123 : vector<1x128xf32>
    %125 = math.rsqrt %124 : vector<1x128xf32>
    %126 = arith.mulf %7, %125 : vector<1x128xf32>
    %127 = arith.mulf %115, %126 : vector<1x128xf32>
    %128 = arith.subf %8, %127 : vector<1x128xf32>
    %129 = vector.broadcast %126 : vector<1x128xf32> to vector<8x128xf32>
    %130 = arith.mulf %111, %129 : vector<8x128xf32>
    %131 = vector.broadcast %128 : vector<1x128xf32> to vector<8x128xf32>
    %132 = arith.addf %130, %131 : vector<8x128xf32>
    %cst_42 = arith.constant dense<0.000000e+00> : vector<8x128xf32>
    %133 = tpu.matmul %132, %2, %cst_42 {dimension_numbers = #tpu.dot_dimension_numbers<[1], [0], [0], [1], [0, 0, 1, 1], [], []>} : vector<8x128xf32>, vector<128x128xf32>, vector<8x128xf32> -> vector<8x128xf32>
    %cst_43 = arith.constant dense<0.000000e+00> : vector<128xf32>
    %134 = vector.multi_reduction <add>, %133, %cst_43 [0] : vector<8x128xf32> to vector<128xf32>
    %135 = vector.shape_cast %134 : vector<128xf32> to vector<1x128xf32>
    %cst_44 = arith.constant 1.250000e-01 : f32
    %136 = vector.broadcast %cst_44 : f32 to vector<1x128xf32>
    %137 = arith.mulf %135, %136 : vector<1x128xf32>
    %138 = arith.mulf %133, %133 : vector<8x128xf32>
    %cst_45 = arith.constant dense<0.000000e+00> : vector<128xf32>
    %139 = vector.multi_reduction <add>, %138, %cst_45 [0] : vector<8x128xf32> to vector<128xf32>
    %140 = vector.shape_cast %139 : vector<128xf32> to vector<1x128xf32>
    %cst_46 = arith.constant 1.250000e-01 : f32
    %141 = vector.broadcast %cst_46 : f32 to vector<1x128xf32>
    %142 = arith.mulf %140, %141 : vector<1x128xf32>
    %143 = arith.mulf %137, %137 : vector<1x128xf32>
    %144 = arith.subf %142, %143 : vector<1x128xf32>
    %cst_47 = arith.constant 9.99999974E-6 : f32
    %145 = vector.broadcast %cst_47 : f32 to vector<1x128xf32>
    %146 = arith.addf %144, %145 : vector<1x128xf32>
    %147 = math.rsqrt %146 : vector<1x128xf32>
    %148 = arith.mulf %9, %147 : vector<1x128xf32>
    %149 = arith.mulf %137, %148 : vector<1x128xf32>
    %150 = arith.subf %10, %149 : vector<1x128xf32>
    %151 = vector.broadcast %148 : vector<1x128xf32> to vector<8x128xf32>
    %152 = arith.mulf %133, %151 : vector<8x128xf32>
    %153 = vector.broadcast %150 : vector<1x128xf32> to vector<8x128xf32>
    %154 = arith.addf %152, %153 : vector<8x128xf32>
    %cst_48 = arith.constant 0.000000e+00 : f32
    %155 = vector.broadcast %cst_48 : f32 to vector<8x128xf32>
    %156 = arith.maximumf %154, %155 : vector<8x128xf32>
    %cst_49 = arith.constant dense<0.000000e+00> : vector<8x128xf32>
    %157 = tpu.matmul %156, %3, %cst_49 {dimension_numbers = #tpu.dot_dimension_numbers<[1], [0], [0], [1], [0, 0, 1, 1], [], []>} : vector<8x128xf32>, vector<128x128xf32>, vector<8x128xf32> -> vector<8x128xf32>
    %158 = vector.broadcast %11 : vector<1x128xf32> to vector<8x128xf32>
    %159 = arith.addf %157, %158 : vector<8x128xf32>
    %c0_50 = arith.constant 0 : index
    %c0_51 = arith.constant 0 : index
    %160 = vector.load %arg3[%c0_50, %c0_51] : memref<32x128xf32, #tpu.memory_space<vmem>>, vector<8x128xf32>
    tpu.vector_store %arg3[%c0_50, %c0_51], %58 {strides = array<i32>} : memref<32x128xf32, #tpu.memory_space<vmem>>, vector<8x128xf32>,
    %c8 = arith.constant 8 : index
    %c0_52 = arith.constant 0 : index
    %161 = vector.load %arg3[%c8, %c0_52] : memref<32x128xf32, #tpu.memory_space<vmem>>, vector<8x128xf32>
    tpu.vector_store %arg3[%c8, %c0_52], %85 {strides = array<i32>} : memref<32x128xf32, #tpu.memory_space<vmem>>, vector<8x128xf32>,
    %c16 = arith.constant 16 : index
    %c0_53 = arith.constant 0 : index
    %162 = vector.load %arg3[%c16, %c0_53] : memref<32x128xf32, #tpu.memory_space<vmem>>, vector<8x128xf32>
    tpu.vector_store %arg3[%c16, %c0_53], %132 {strides = array<i32>} : memref<32x128xf32, #tpu.memory_space<vmem>>, vector<8x128xf32>,
    %c24 = arith.constant 24 : index
    %c0_54 = arith.constant 0 : index
    %163 = vector.load %arg3[%c24, %c0_54] : memref<32x128xf32, #tpu.memory_space<vmem>>, vector<8x128xf32>
    tpu.vector_store %arg3[%c24, %c0_54], %159 {strides = array<i32>} : memref<32x128xf32, #tpu.memory_space<vmem>>, vector<8x128xf32>,
    return
  }
}

</mosaic_0001>

<bundles_post_ra>
// kernel: _lambda_.1
= control target key start
LH: loop header
LB: loop body
LE: loop exit
PB: predicated region body
PF: predicated region fallthrough
CT: control target
= control target key end

     0   :  { %8 = vsyncpa [#allocation3], 0  ;;  %s1847_s0 = inlined_call_operand.hbm [shape: f32[8,64], index: 0, kind: input, shape index: {}]   ;;  %s1848_s1 = inlined_call_operand.hbm [shape: f32[8,64], index: 1, kind: input, shape index: {}]   ;;  %s1849_s2 = inlined_call_operand.hbm [shape: f32[456,128], index: 2, kind: input, shape index: {}]   ;;  %s1850_s3 = inlined_call_operand.vmem [shape: f32[32,128], index: 3, kind: output, shape index: {}]  }
   0x1   :  { %9 = vsyncpa [#allocation5], 0  ;;  %s1533_s12 = smov [#allocation4]   ;;  %s1534_s14 = smov [#allocation2]  }
   0x2   :  { %s26_s13 = sshll.u32 %s1533_s12, 4  ;;  %s16_s15 = sshll.u32 %s1534_s14, 4  ;;  %s27_s13 = int_to_ptr.vmem [resolvable:$true] %s26_s13  ;;  %s17_s15 = int_to_ptr.vmem [resolvable:$true] %s16_s15 }
   0x3   :  { %s1463_s18 = scalar_lea.hbm %s1848_s1, 128 }
   0x4   :  { %p1464_p0 = scmp.ne.s32.totalorder %s1848_s1, %s1463_s18  ;;  %p1467_p1 = scmp.lt.u32.totalorder %s1463_s18, %s1848_s1 }
   0x6   :  { %p1469_p2 = pnand %p1467_p1, %p1464_p0 }
   0x8   :  { %1472 = shalt.err (!%p1469_p2)
}
   0x9   :  { %s1473_s23 = scalar_lea.vmem %s27_s13, 128  ;;  %p1478_p4 = scmp.lt.s32.totalorder %s27_s13, %s27_s13 }
   0xa   :  { %p1474_p3 = scmp.ne.s32.totalorder %s27_s13, %s1473_s23  ;;  %p1479_p5 = scmp.lt.s32.totalorder %s1473_s23, %s1473_s23 }
   0xc   :  { %p1480_p6 = por %p1479_p5, %p1478_p4 }
   0xe   :  { %p1481_p7 = pnand %p1480_p6, %p1474_p3 }
  0x10   :  { %1484 = shalt.err (!%p1481_p7)
}
  0x11   :  { %29 = dma.hbm_to_vmem [thread:$0]  %s1848_s1, 128, %s27_s13, [#allocation5]  }
  0x12   :  { %s1485_s28 = scalar_lea.hbm %s1847_s0, 128 }
  0x13   :  { %p1486_p8 = scmp.ne.s32.totalorder %s1847_s0, %s1485_s28  ;;  %p1489_p9 = scmp.lt.u32.totalorder %s1485_s28, %s1847_s0 }
  0x15   :  { %p1491_p10 = pnand %p1489_p9, %p1486_p8 }
  0x17   :  { %1494 = shalt.err (!%p1491_p10)
}
  0x18   :  { %s1495_s6 = scalar_lea.vmem %s17_s15, 128  ;;  %p1500_p12 = scmp.lt.s32.totalorder %s17_s15, %s17_s15 }
  0x19   :  { %p1496_p11 = scmp.ne.s32.totalorder %s17_s15, %s1495_s6  ;;  %p1501_p13 = scmp.lt.s32.totalorder %s1495_s6, %s1495_s6 }
  0x1b   :  { %p1502_p0 = por %p1501_p13, %p1500_p12 }
  0x1d   :  { %p1503_p1 = pnand %p1502_p0, %p1496_p11 }
  0x1f   :  { %1506 = shalt.err (!%p1503_p1)
}
  0x20   :  { %19 = dma.hbm_to_vmem [thread:$0]  %s1847_s0, 128, %s17_s15, [#allocation3]  }
  0x21   :  { %s1535_s8 = smov [#allocation6]   ;;  %s1507_s12 = scalar_lea.hbm %s1849_s2, 7296 }
  0x22   :  { %s35_s9 = sshll.u32 %s1535_s8, 4  ;;  %p1508_p2 = scmp.ne.s32.totalorder %s1849_s2, %s1507_s12  ;;  %s36_s9 = int_to_ptr.vmem [resolvable:$true] %s35_s9 }
  0x23   :  { %p1511_p3 = scmp.lt.u32.totalorder %s1507_s12, %s1849_s2 }
  0x25   :  { %p1513_p4 = pnand %p1511_p3, %p1508_p2 }
  0x27   :  { %1516 = shalt.err (!%p1513_p4)
}
  0x28   :  { %s1517_s18 = scalar_lea.vmem %s36_s9, 7296  ;;  %p1522_p6 = scmp.lt.s32.totalorder %s36_s9, %s36_s9 }
  0x29   :  { %p1518_p5 = scmp.ne.s32.totalorder %s36_s9, %s1517_s18  ;;  %p1523_p7 = scmp.lt.s32.totalorder %s1517_s18, %s1517_s18 }
  0x2b   :  { %p1524_p8 = por %p1523_p7, %p1522_p6 }
  0x2d   :  { %p1525_p9 = pnand %p1524_p8, %p1518_p5 }
  0x2f   :  { %1528 = shalt.err (!%p1525_p9)
}
  0x30   :  { %s1536_s0 = smov 128   ;;  %s1537_s15 = smov 8  }
  0x31   :  { %41 = dma.hbm_to_vmem [thread:$0]  %s1849_s2, 7296, %s36_s9, [#allocation5], %s1536_s0, %s1536_s0, %s1537_s15  }
  0x32   :  { %1529 = dma.done.wait [#allocation3], 128  }
  0x33   :  { %1530 = vsyncadd [#allocation3], 4294967168 }
  0x34   :  { %1531 = dma.done.wait [#allocation5], 7424  }
  0x35   :  { %1532 = vsyncadd [#allocation5], 4294959872  ;;  %v1538_v0 = vmov 0.0|0.0   ;;  %vm1539_vm0 = vmmov 0   ;;  %v1540_v1 = vmov 0.0   ;;  %v51_v2 = vld [vmem:[#allocation6] sm:$0xff]  ;;  %v208_v59 = vlaneseq }
  0x36   :  { %1275 = vmatprep.subr.bf16.mxu1 %v1538_v0  ;;  %1043 = vmatprep.mubr.msk.f32.mxu1 %vm1539_vm0, %v1540_v1  ;;  %v52_v3 = vld [vmem:[#allocation6 + $0x8] sm:$0xff]  ;;  %v53_v4 = vld [vmem:[#allocation6 + $0x10] sm:$0xff]  ;;  %v54_v6 = vld [vmem:[#allocation6 + $0x18] sm:$0xff]  ;;  %vm109_vm1 = vcmask 523264  }
  0x37   :  { %1311 = vmatprep.subr.bf16.mxu0 %v1538_v0  ;;  %1113 = vmatprep.mubr.msk.f32.mxu0 %vm1539_vm0, %v1540_v1  ;;  %v1603_v5 = vpack.c.bf16 %v52_v3, %v51_v2  ;;  %v1606_v7 = vpack.c.bf16 %v54_v6, %v53_v4  ;;  %v55_v8 = vld [vmem:[#allocation6 + $0x20] sm:$0xff]  ;;  %v56_v9 = vld [vmem:[#allocation6 + $0x28] sm:$0xff]  ;;  %v57_v11 = vld [vmem:[#allocation6 + $0x30] sm:$0xff]  ;;  %v1654_v60 = vshrl.u32 %v208_v59, 7 }
  0x38   :  { %v1610_v10 = vpack.c.bf16 %v56_v9, %v55_v8  ;;  %v58_v12 = vld [vmem:[#allocation6 + $0x38] sm:$0xff]  ;;  %v108_v14 = vld [vmem:[#allocation2] sm:$0xff]  ;;  %v59_v15 = vld [vmem:[#allocation6 + $0x40] sm:$0xff] }
  0x39   :  { %1277 = vmatpush3.bf16.msra.mxu1 %v1603_v5  ;;  %v1614_v13 = vpack.c.bf16 %v58_v12, %v57_v11  ;;  %v60_v16 = vld [vmem:[#allocation6 + $0x48] sm:$0xff]  ;;  %v61_v18 = vld [vmem:[#allocation6 + $0x50] sm:$0xff]  ;;  %v62_v19 = vld [vmem:[#allocation6 + $0x58] sm:$0xff]  ;;  %v210_v2 = vsub.s32 0, %v1654_v60  ;;  %v215_v8 = vsub.s32 1, %v1654_v60 }
  0x3a   :  { %1278 = vmatprep.subr.bf16.mxu1 %v1538_v0  ;;  %v1622_v17 = vpack.c.bf16 %v60_v16, %v59_v15  ;;  %v1626_v20 = vpack.c.bf16 %v62_v19, %v61_v18  ;;  %v63_v21 = vld [vmem:[#allocation6 + $0x60] sm:$0xff]  ;;  %v64_v22 = vld [vmem:[#allocation6 + $0x68] sm:$0xff]  ;;  %v65_v24 = vld [vmem:[#allocation6 + $0x70] sm:$0xff] }
  0x3b   :  { %v1630_v23 = vpack.c.bf16 %v64_v22, %v63_v21  ;;  %v66_v25 = vld [vmem:[#allocation6 + $0x78] sm:$0xff]  ;;  %v67_v27 = vld [vmem:[#allocation6 + $0x80] sm:$0xff]  ;;  %v68_v28 = vld [vmem:[#allocation6 + $0x88] sm:$0xff] }
  0x3c   :  { %v1634_v26 = vpack.c.bf16 %v66_v25, %v65_v24  ;;  %v1638_v29 = vpack.c.bf16 %v68_v28, %v67_v27  ;;  %v69_v30 = vld [vmem:[#allocation6 + $0x90] sm:$0xff]  ;;  %v70_v31 = vld [vmem:[#allocation6 + $0x98] sm:$0xff]  ;;  %v71_v33 = vld [vmem:[#allocation6 + $0xa0] sm:$0xff] }
  0x3d   :  { %1280 = vmatpush3.bf16.msra.mxu1 %v1606_v7  ;;  %v1642_v32 = vpack.c.bf16 %v70_v31, %v69_v30  ;;  %v72_v34 = vld [vmem:[#allocation6 + $0xa8] sm:$0xff]  ;;  %v73_v36 = vld [vmem:[#allocation6 + $0xb0] sm:$0xff]  ;;  %v74_v37 = vld [vmem:[#allocation6 + $0xb8] sm:$0xff] }
  0x3e   :  { %1281 = vmatprep.subr.bf16.mxu1 %v1538_v0  ;;  %v1646_v35 = vpack.c.bf16 %v72_v34, %v71_v33  ;;  %v1650_v38 = vpack.c.bf16 %v74_v37, %v73_v36  ;;  %v1656_v61 = vld [vmem:[#allocation6 + $0x1c0] sm:$0xff]  ;;  %v76_v18 = vld [vmem:[#allocation6 + $0xc8] sm:$0xff]  ;;  %v77_v21 = vld [vmem:[#allocation6 + $0xd0] sm:$0xff] }
  0x3f   :  { %v75_v16 = vld [vmem:[#allocation6 + $0xc0] sm:$0xff]  ;;  %v78_v22 = vld [vmem:[#allocation6 + $0xd8] sm:$0xff]  ;;  %v80_v27 = vld [vmem:[#allocation6 + $0xe8] sm:$0xff] }
  0x40   :  { %v1668_v19 = vpack.c.bf16 %v76_v18, %v75_v16  ;;  %v1672_v24 = vpack.c.bf16 %v78_v22, %v77_v21  ;;  %v79_v25 = vld [vmem:[#allocation6 + $0xe0] sm:$0xff]  ;;  %v81_v30 = vld [vmem:[#allocation6 + $0xf0] sm:$0xff]  ;;  %v82_v31 = vld [vmem:[#allocation6 + $0xf8] sm:$0xff]  ;;  %v316_v16 = vsub.s32 2, %v1654_v60 }
  0x41   :  { %1283 = vmatpush3.bf16.msra.mxu1 %v1610_v10  ;;  %v1676_v28 = vpack.c.bf16 %v80_v27, %v79_v25  ;;  %v1680_v33 = vpack.c.bf16 %v82_v31, %v81_v30  ;;  %v83_v34 = vld [vmem:[#allocation6 + $0x100] sm:$0xff]  ;;  %v84_v36 = vld [vmem:[#allocation6 + $0x108] sm:$0xff]  ;;  %v321_v25 = vsub.s32 3, %v1654_v60 }
  0x42   :  { %1284 = vmatprep.subr.bf16.mxu1 %v1538_v0  ;;  %1313 = vmatpush3.bf16.msra.mxu0 %v1668_v19  ;;  %v1684_v37 = vpack.c.bf16 %v84_v36, %v83_v34  ;;  %v504_v36 = vld [vmem:[#allocation4] sm:$0xff] }
  0x43   :  { %1314 = vmatprep.subr.bf16.mxu0 %v1538_v0 }
  0x45   :  { %1286 = vmatpush3.bf16.msra.mxu1 %v1614_v13 }
  0x46   :  { %1287 = vmatprep.subr.bf16.mxu1 %v1538_v0  ;;  %1316 = vmatpush3.bf16.msra.mxu0 %v1672_v24 }
  0x47   :  { %1317 = vmatprep.subr.bf16.mxu0 %v1538_v0 }
  0x48   :  { %1044 = vmatmul.mubr.msk.f32.vlgmr.msra.gmra.mrb[0].mxu1 %vm109_vm1, %v108_v14 }
  0x49   :  { %1078 = vmatprep.mubr.msk.f32.mxu1 %vm1539_vm0, %v1540_v1  ;;  %1289 = vmatpush3.bf16.msra.mxu1 %v1622_v17 }
  0x4a   :  { %1290 = vmatprep.subr.bf16.mxu1 %v1538_v0  ;;  %1319 = vmatpush3.bf16.msra.mxu0 %v1676_v28 }
  0x4b   :  { %1320 = vmatprep.subr.bf16.mxu0 %v1538_v0 }
  0x4d   :  { %1292 = vmatpush3.bf16.msra.mxu1 %v1626_v20 }
  0x4e   :  { %1293 = vmatprep.subr.bf16.mxu1 %v1538_v0  ;;  %1322 = vmatpush3.bf16.msra.mxu0 %v1680_v33 }
  0x4f   :  { %1323 = vmatprep.subr.bf16.mxu0 %v1538_v0 }
  0x51   :  { %1295 = vmatpush3.bf16.msra.mxu1 %v1630_v23 }
  0x52   :  { %1296 = vmatprep.subr.bf16.mxu1 %v1538_v0  ;;  %1325 = vmatpush3.bf16.msra.mxu0 %v1684_v37 }
  0x53   :  { %1326 = vmatprep.subr.bf16.mxu0 %v1538_v0 }
  0x55   :  { %1298 = vmatpush3.bf16.msra.mxu1 %v1634_v26 }
  0x56   :  { %1299 = vmatprep.subr.bf16.mxu1 %v1538_v0 }
  0x59   :  { %1301 = vmatpush3.bf16.msra.mxu1 %v1638_v29 }
  0x5a   :  { %1302 = vmatprep.subr.bf16.mxu1 %v1538_v0 }
  0x5d   :  { %1304 = vmatpush3.bf16.msra.mxu1 %v1642_v32 }
  0x5e   :  { %1305 = vmatprep.subr.bf16.mxu1 %v1538_v0 }
  0x61   :  { %1307 = vmatpush3.bf16.msra.mxu1 %v1646_v35 }
  0x62   :  { %1308 = vmatprep.subr.bf16.mxu1 %v1538_v0 }
  0x65   :  { %1310 = vmatpush3.bf16.msra.mxu1 %v1650_v38 }
  0x66   :  { %1335 = vmatprep.subr.bf16.mxu1 %v1538_v0 }
 0x11b   :  { %v179_v39 = vpop.f32.mrb[0].mxu1 }
 0x11c   :  { %v183_v40 = vrot.slane %v179_v39, 4  ;;  %v190_v41 = vmul.f32 %v179_v39, %v179_v39  ;;  %v1045_v42 = vpop.f32.mrb[1].mxu1 }
 0x11d   :  { %v87_v42 = vld [vmem:[#allocation6 + $0x120] sm:$0xff] }
 0x11e   :  { %v184_v43 = vadd.f32 %v183_v40, %v179_v39  ;;  %v191_v44 = vrot.slane %v190_v41, 4  ;;  %v86_v40 = vld [vmem:[#allocation6 + $0x118] sm:$0xff] }
 0x120   :  { %v185_v45 = vrot.slane %v184_v43, 2  ;;  %v192_v46 = vadd.f32 %v191_v44, %v190_v41 }
 0x122   :  { %v186_v47 = vadd.f32 %v185_v45, %v184_v43  ;;  %v193_v48 = vrot.slane %v192_v46, 2  ;;  %v88_v43 = vld [vmem:[#allocation6 + $0x128] sm:$0xff]  ;;  %v89_v45 = vld [vmem:[#allocation6 + $0x130] sm:$0xff] }
 0x123   :  { %v1692_v44 = vpack.c.bf16 %v88_v43, %v87_v42  ;;  %v101_v43 = vld [vmem:[#allocation6 + $0x190] sm:$0xff] }
 0x124   :  { %v187_v49 = vrot.slane %v186_v47, 1  ;;  %v194_v50 = vadd.f32 %v193_v48, %v192_v46  ;;  %v90_v46 = vld [vmem:[#allocation6 + $0x138] sm:$0xff] }
 0x126   :  { %v188_v51 = vadd.f32 %v187_v49, %v186_v47  ;;  %v195_v52 = vrot.slane %v194_v50, 1  ;;  %v1696_v47 = vpack.c.bf16 %v90_v46, %v89_v45  ;;  %v102_v45 = vld [vmem:[#allocation6 + $0x198] sm:$0xff] }
 0x127   :  { %v1760_v46 = vpack.c.bf16 %v102_v45, %v101_v43 }
 0x128   :  { %v189_v53 = vmul.f32 0.125, %v188_v51  ;;  %v196_v54 = vadd.f32 %v195_v52, %v194_v50 }
 0x12a   :  { %v197_v55 = vmul.f32 0.125, %v196_v54  ;;  %v198_v56 = vmul.f32 %v189_v53, %v189_v53 }
 0x12c   :  { %v199_v57 = vsub.f32 %v197_v55, %v198_v56 }
 0x12e   :  { %v200_v58 = vadd.f32 1e-05, %v199_v57 }
 0x130   :  { %1451 = vrsqrt.f32 %v200_v58 }
 0x13a   :  { %v1452_v62 = vpop.eup %1451 }
 0x13b   :  { %v202_v63 = vmul.f32 %v1452_v62, %v1656_v61 }
 0x13d   :  { %v203_v3 = vmul.f32 %v202_v63, %v189_v53  ;;  %v211_v6 = vrot.slane %v202_v63, %v210_v2 }
 0x13f   :  { %v205_v4 = vrot.slane %v203_v3, 7  ;;  %v212_v11 = vmul.f32 %v211_v6, %v179_v39  ;;  %v85_v39 = vld [vmem:[#allocation6 + $0x110] sm:$0xff] }
 0x140   :  { %v1688_v41 = vpack.c.bf16 %v86_v40, %v85_v39  ;;  %v99_v39 = vld [vmem:[#allocation6 + $0x180] sm:$0xff]  ;;  %v100_v40 = vld [vmem:[#allocation6 + $0x188] sm:$0xff] }
 0x141   :  { %v207_v9 = vsub.f32 %v1656_v61, %v205_v4  ;;  %v1756_v42 = vpack.c.bf16 %v100_v40, %v99_v39 }
 0x142   :  { %1328 = vmatpush3.bf16.msra.mxu0 %v1688_v41 }
 0x143   :  { %v216_v12 = vrot.slane %v207_v9, %v215_v8  ;;  %1329 = vmatprep.subr.bf16.mxu0 %v1538_v0 }
 0x145   :  { %v217_v14 = vadd.f32 %v216_v12, %v212_v11 }
 0x146   :  { %1331 = vmatpush3.bf16.msra.mxu0 %v1692_v44 }
 0x147   :  { %v218_v15 = vmax.f32 %v217_v14, 0.0  ;;  %1332 = vmatprep.subr.bf16.mxu0 %v1538_v0 }
 0x149   :  { %1079 = vmatmul.mubr.f32.vlgmr.msra.gmra.mrb[2].mxu1 %v218_v15 }
 0x14a   :  { %1148 = vmatprep.mubr.msk.f32.mxu1 %vm1539_vm0, %v1540_v1  ;;  %1334 = vmatpush3.bf16.msra.mxu0 %v1696_v47 }
 0x14b   :  { %1359 = vmatprep.subr.bf16.mxu0 %v1538_v0 }
 0x21c   :  { %v285_v48 = vpop.f32.mrb[2].mxu1 }
 0x21d   :  { %v289_v49 = vrot.slane %v285_v48, 4  ;;  %v296_v50 = vmul.f32 %v285_v48, %v285_v48  ;;  %v1080_v51 = vpop.f32.mrb[3].mxu1 }
 0x21e   :  { %v105_v51 = vld [vmem:[#allocation6 + $0x1b0] sm:$0xff] }
 0x21f   :  { %v290_v52 = vadd.f32 %v289_v49, %v285_v48  ;;  %v297_v53 = vrot.slane %v296_v50, 4  ;;  %v104_v49 = vld [vmem:[#allocation6 + $0x1a8] sm:$0xff] }
 0x221   :  { %v291_v54 = vrot.slane %v290_v52, 2  ;;  %v298_v55 = vadd.f32 %v297_v53, %v296_v50 }
 0x223   :  { %v292_v56 = vadd.f32 %v291_v54, %v290_v52  ;;  %v299_v57 = vrot.slane %v298_v55, 2  ;;  %v106_v52 = vld [vmem:[#allocation6 + $0x1b8] sm:$0xff] }
 0x224   :  { %v1768_v53 = vpack.c.bf16 %v106_v52, %v105_v51 }
 0x225   :  { %v293_v58 = vrot.slane %v292_v56, 1  ;;  %v300_v59 = vadd.f32 %v299_v57, %v298_v55 }
 0x227   :  { %v294_v62 = vadd.f32 %v293_v58, %v292_v56  ;;  %v301_v63 = vrot.slane %v300_v59, 1 }
 0x229   :  { %v295_v3 = vmul.f32 0.125, %v294_v62  ;;  %v302_v4 = vadd.f32 %v301_v63, %v300_v59 }
 0x22b   :  { %v303_v6 = vmul.f32 0.125, %v302_v4  ;;  %v304_v9 = vmul.f32 %v295_v3, %v295_v3 }
 0x22d   :  { %v305_v11 = vsub.f32 %v303_v6, %v304_v9 }
 0x22f   :  { %v306_v12 = vadd.f32 1e-05, %v305_v11 }
 0x231   :  { %1453 = vrsqrt.f32 %v306_v12 }
 0x23b   :  { %v1454_v14 = vpop.eup %1453 }
 0x23c   :  { %v308_v15 = vmul.f32 %v1454_v14, %v1656_v61 }
 0x23e   :  { %v309_v18 = vmul.f32 %v308_v15, %v295_v3  ;;  %v317_v21 = vrot.slane %v308_v15, %v316_v16 }
 0x240   :  { %v311_v22 = vrot.slane %v309_v18, 7  ;;  %v318_v30 = vmul.f32 %v317_v21, %v285_v48  ;;  %v103_v48 = vld [vmem:[#allocation6 + $0x1a0] sm:$0xff] }
 0x241   :  { %v1764_v50 = vpack.c.bf16 %v104_v49, %v103_v48 }
 0x242   :  { %v313_v27 = vsub.f32 %v1656_v61, %v311_v22 }
 0x244   :  { %v322_v31 = vrot.slane %v313_v27, %v321_v25 }
 0x246   :  { %v323_v34 = vadd.f32 %v322_v31, %v318_v30 }
 0x248   :  { %1114 = vmatmul.mubr.f32.vlgmr.msra.gmra.mrb[0].mxu0 %v323_v34  ;;  %895 = vst [vmem:[%s1850_s3] sm:$0xff] %v323_v34 }
 0x249   :  { %1361 = vmatpush3.bf16.msra.mxu0 %v1603_v5  ;;  %1167 = vmatprep.mubr.msk.f32.mxu0 %vm1539_vm0, %v1540_v1  ;;  %v91_v5 = vld [vmem:[#allocation6 + $0x140] sm:$0xff] }
 0x24a   :  { %1362 = vmatprep.subr.bf16.mxu0 %v1538_v0 }
 0x24d   :  { %1364 = vmatpush3.bf16.msra.mxu0 %v1606_v7  ;;  %v92_v7 = vld [vmem:[#allocation6 + $0x148] sm:$0xff] }
 0x24e   :  { %1365 = vmatprep.subr.bf16.mxu0 %v1538_v0 }
 0x251   :  { %1367 = vmatpush3.bf16.msra.mxu0 %v1610_v10  ;;  %v1740_v10 = vpack.c.bf16 %v92_v7, %v91_v5 }
 0x252   :  { %1368 = vmatprep.subr.bf16.mxu0 %v1538_v0 }
 0x253   :  { %1337 = vmatpush3.bf16.msra.mxu1 %v1740_v10 }
 0x254   :  { %1338 = vmatprep.subr.bf16.mxu1 %v1538_v0 }
 0x255   :  { %1370 = vmatpush3.bf16.msra.mxu0 %v1614_v13  ;;  %v93_v13 = vld [vmem:[#allocation6 + $0x150] sm:$0xff] }
 0x256   :  { %1371 = vmatprep.subr.bf16.mxu0 %v1538_v0 }
 0x258   :  { %1168 = vmatmul.mubr.msk.f32.vlgmr.msra.gmra.mrb[2].mxu0 %vm109_vm1, %v504_v36 }
 0x259   :  { %1373 = vmatpush3.bf16.msra.mxu0 %v1622_v17  ;;  %1202 = vmatprep.mubr.msk.f32.mxu0 %vm1539_vm0, %v1540_v1  ;;  %v94_v17 = vld [vmem:[#allocation6 + $0x158] sm:$0xff] }
 0x25a   :  { %1374 = vmatprep.subr.bf16.mxu0 %v1538_v0 }
 0x25d   :  { %1376 = vmatpush3.bf16.msra.mxu0 %v1626_v20  ;;  %v1744_v20 = vpack.c.bf16 %v94_v17, %v93_v13 }
 0x25e   :  { %1377 = vmatprep.subr.bf16.mxu0 %v1538_v0 }
 0x25f   :  { %1340 = vmatpush3.bf16.msra.mxu1 %v1744_v20 }
 0x260   :  { %1341 = vmatprep.subr.bf16.mxu1 %v1538_v0 }
 0x261   :  { %1379 = vmatpush3.bf16.msra.mxu0 %v1630_v23  ;;  %v95_v23 = vld [vmem:[#allocation6 + $0x160] sm:$0xff] }
 0x262   :  { %1380 = vmatprep.subr.bf16.mxu0 %v1538_v0 }
 0x265   :  { %1382 = vmatpush3.bf16.msra.mxu0 %v1634_v26  ;;  %v96_v26 = vld [vmem:[#allocation6 + $0x168] sm:$0xff] }
 0x266   :  { %1383 = vmatprep.subr.bf16.mxu0 %v1538_v0 }
 0x269   :  { %1385 = vmatpush3.bf16.msra.mxu0 %v1638_v29  ;;  %v1748_v29 = vpack.c.bf16 %v96_v26, %v95_v23 }
 0x26a   :  { %1386 = vmatprep.subr.bf16.mxu0 %v1538_v0 }
 0x26b   :  { %1343 = vmatpush3.bf16.msra.mxu1 %v1748_v29 }
 0x26c   :  { %1344 = vmatprep.subr.bf16.mxu1 %v1538_v0 }
 0x26d   :  { %1388 = vmatpush3.bf16.msra.mxu0 %v1642_v32  ;;  %v97_v32 = vld [vmem:[#allocation6 + $0x170] sm:$0xff] }
 0x26e   :  { %1389 = vmatprep.subr.bf16.mxu0 %v1538_v0 }
 0x271   :  { %1391 = vmatpush3.bf16.msra.mxu0 %v1646_v35  ;;  %v98_v35 = vld [vmem:[#allocation6 + $0x178] sm:$0xff] }
 0x272   :  { %1392 = vmatprep.subr.bf16.mxu0 %v1538_v0 }
 0x275   :  { %1394 = vmatpush3.bf16.msra.mxu0 %v1650_v38  ;;  %v1752_v38 = vpack.c.bf16 %v98_v35, %v97_v32 }
 0x276   :  { %1419 = vmatprep.subr.bf16.mxu0 %v1538_v0 }
 0x277   :  { %1346 = vmatpush3.bf16.msra.mxu1 %v1752_v38 }
 0x278   :  { %1347 = vmatprep.subr.bf16.mxu1 %v1538_v0 }
 0x27b   :  { %1349 = vmatpush3.bf16.msra.mxu1 %v1756_v42 }
 0x27c   :  { %1350 = vmatprep.subr.bf16.mxu1 %v1538_v0 }
 0x27f   :  { %1352 = vmatpush3.bf16.msra.mxu1 %v1760_v46 }
 0x280   :  { %1353 = vmatprep.subr.bf16.mxu1 %v1538_v0 }
 0x283   :  { %1355 = vmatpush3.bf16.msra.mxu1 %v1764_v50 }
 0x284   :  { %1356 = vmatprep.subr.bf16.mxu1 %v1538_v0 }
 0x287   :  { %1358 = vmatpush3.bf16.msra.mxu1 %v1768_v53 }
 0x288   :  { %1395 = vmatprep.subr.bf16.mxu1 %v1538_v0 }
 0x31b   :  { %v390_v54 = vpop.f32.mrb[0].mxu0 }
 0x31c   :  { %v394_v55 = vrot.slane %v390_v54, 4  ;;  %v401_v56 = vmul.f32 %v390_v54, %v390_v54  ;;  %v1115_v57 = vpop.f32.mrb[1].mxu0 }
 0x31e   :  { %v395_v58 = vadd.f32 %v394_v55, %v390_v54  ;;  %v402_v59 = vrot.slane %v401_v56, 4  ;;  %v421_v55 = vsub.s32 4, %v1654_v60 }
 0x320   :  { %v396_v62 = vrot.slane %v395_v58, 2  ;;  %v403_v63 = vadd.f32 %v402_v59, %v401_v56 }
 0x322   :  { %v397_v3 = vadd.f32 %v396_v62, %v395_v58  ;;  %v404_v4 = vrot.slane %v403_v63, 2 }
 0x324   :  { %v398_v6 = vrot.slane %v397_v3, 1  ;;  %v405_v9 = vadd.f32 %v404_v4, %v403_v63  ;;  %v426_v63 = vsub.s32 5, %v1654_v60 }
 0x326   :  { %v399_v11 = vadd.f32 %v398_v6, %v397_v3  ;;  %v406_v12 = vrot.slane %v405_v9, 1 }
 0x328   :  { %v400_v14 = vmul.f32 0.125, %v399_v11  ;;  %v407_v15 = vadd.f32 %v406_v12, %v405_v9 }
 0x32a   :  { %v408_v18 = vmul.f32 0.125, %v407_v15  ;;  %v409_v21 = vmul.f32 %v400_v14, %v400_v14 }
 0x32b   :  { %v574_v22 = vpop.f32.mrb[2].mxu0 }
 0x32c   :  { %v410_v27 = vsub.f32 %v408_v18, %v409_v21  ;;  %v578_v30 = vrot.slane %v574_v22, 4  ;;  %v585_v31 = vmul.f32 %v574_v22, %v574_v22  ;;  %v1169_v34 = vpop.f32.mrb[3].mxu0 }
 0x32e   :  { %v411_v36 = vadd.f32 1e-05, %v410_v27  ;;  %v579_v5 = vadd.f32 %v578_v30, %v574_v22  ;;  %v586_v7 = vrot.slane %v585_v31, 4 }
 0x330   :  { %1455 = vrsqrt.f32 %v411_v36  ;;  %v580_v13 = vrot.slane %v579_v5, 2  ;;  %v587_v17 = vadd.f32 %v586_v7, %v585_v31 }
 0x332   :  { %v581_v23 = vadd.f32 %v580_v13, %v579_v5  ;;  %v588_v26 = vrot.slane %v587_v17, 2 }
 0x334   :  { %v582_v32 = vrot.slane %v581_v23, 1  ;;  %v589_v35 = vadd.f32 %v588_v26, %v587_v17 }
 0x336   :  { %v583_v39 = vadd.f32 %v582_v32, %v581_v23  ;;  %v590_v40 = vrot.slane %v589_v35, 1 }
 0x338   :  { %v584_v43 = vmul.f32 0.125, %v583_v39  ;;  %v591_v45 = vadd.f32 %v590_v40, %v589_v35 }
 0x33a   :  { %v1456_v48 = vpop.eup %1455  ;;  %v592_v49 = vmul.f32 0.125, %v591_v45  ;;  %v593_v51 = vmul.f32 %v584_v43, %v584_v43 }
 0x33b   :  { %v413_v52 = vmul.f32 %v1456_v48, %v1656_v61 }
 0x33c   :  { %v594_v56 = vsub.f32 %v592_v49, %v593_v51 }
 0x33d   :  { %v414_v57 = vmul.f32 %v413_v52, %v400_v14  ;;  %v422_v62 = vrot.slane %v413_v52, %v421_v55 }
 0x33e   :  { %v595_v58 = vadd.f32 1e-05, %v594_v56 }
 0x33f   :  { %v416_v59 = vrot.slane %v414_v57, 7  ;;  %v423_v4 = vmul.f32 %v422_v62, %v390_v54 }
 0x340   :  { %1457 = vrsqrt.f32 %v595_v58 }
 0x341   :  { %v418_v3 = vsub.f32 %v1656_v61, %v416_v59 }
 0x343   :  { %v427_v6 = vrot.slane %v418_v3, %v426_v63 }
 0x345   :  { %v428_v9 = vadd.f32 %v427_v6, %v423_v4 }
 0x347   :  { %v429_v11 = vmax.f32 %v428_v9, 0.0 }
 0x349   :  { %1149 = vmatmul.mubr.f32.vlgmr.msra.gmra.mrb[4].mxu1 %v429_v11 }
 0x34a   :  { %v1458_v12 = vpop.eup %1457  ;;  %1397 = vmatpush3.bf16.msra.mxu1 %v1668_v19  ;;  %1237 = vmatprep.mubr.msk.f32.mxu1 %vm1539_vm0, %v1540_v1 }
 0x34b   :  { %v597_v14 = vmul.f32 %v1458_v12, %v1656_v61  ;;  %1398 = vmatprep.subr.bf16.mxu1 %v1538_v0 }
 0x34d   :  { %v598_v15 = vmul.f32 %v597_v14, %v584_v43  ;;  %v606_v18 = vrot.slane %v597_v14, %v210_v2 }
 0x34e   :  { %1400 = vmatpush3.bf16.msra.mxu1 %v1672_v24 }
 0x34f   :  { %v600_v54 = vrot.slane %v598_v15, 7  ;;  %1401 = vmatprep.subr.bf16.mxu1 %v1538_v0  ;;  %v607_v19 = vmul.f32 %v606_v18, %v574_v22 }
 0x351   :  { %v602_v21 = vsub.f32 %v1656_v61, %v600_v54 }
 0x352   :  { %1403 = vmatpush3.bf16.msra.mxu1 %v1676_v28 }
 0x353   :  { %v611_v27 = vrot.slane %v602_v21, %v215_v8  ;;  %1404 = vmatprep.subr.bf16.mxu1 %v1538_v0 }
 0x355   :  { %v612_v30 = vadd.f32 %v611_v27, %v607_v19 }
 0x356   :  { %1406 = vmatpush3.bf16.msra.mxu1 %v1680_v33 }
 0x357   :  { %v613_v24 = vmax.f32 %v612_v30, 0.0  ;;  %1407 = vmatprep.subr.bf16.mxu1 %v1538_v0 }
 0x359   :  { %1203 = vmatmul.mubr.f32.vlgmr.msra.gmra.mrb[4].mxu0 %v613_v24 }
 0x35a   :  { %1409 = vmatpush3.bf16.msra.mxu1 %v1684_v37  ;;  %1421 = vmatpush3.bf16.msra.mxu0 %v1740_v10 }
 0x35b   :  { %1410 = vmatprep.subr.bf16.mxu1 %v1538_v0  ;;  %1422 = vmatprep.subr.bf16.mxu0 %v1538_v0 }
 0x35c   :  { %1272 = vmatprep.mubr.msk.f32.mxu0 %vm1539_vm0, %v1540_v1  ;;  %v432_v1 = vsub.s32 6, %v1654_v60 }
 0x35e   :  { %1412 = vmatpush3.bf16.msra.mxu1 %v1688_v41  ;;  %1424 = vmatpush3.bf16.msra.mxu0 %v1744_v20  ;;  %v1822_v2 = vrot.slane %v1656_v61, %v432_v1 }
 0x35f   :  { %1413 = vmatprep.subr.bf16.mxu1 %v1538_v0  ;;  %1425 = vmatprep.subr.bf16.mxu0 %v1538_v0 }
 0x362   :  { %1415 = vmatpush3.bf16.msra.mxu1 %v1692_v44  ;;  %1427 = vmatpush3.bf16.msra.mxu0 %v1748_v29 }
 0x363   :  { %1416 = vmatprep.subr.bf16.mxu1 %v1538_v0  ;;  %1428 = vmatprep.subr.bf16.mxu0 %v1538_v0 }
 0x366   :  { %1418 = vmatpush3.bf16.msra.mxu1 %v1696_v47  ;;  %1430 = vmatpush3.bf16.msra.mxu0 %v1752_v38 }
 0x367   :  { %1431 = vmatprep.subr.bf16.mxu0 %v1538_v0 }
 0x36a   :  { %1433 = vmatpush3.bf16.msra.mxu0 %v1756_v42 }
 0x36b   :  { %1434 = vmatprep.subr.bf16.mxu0 %v1538_v0 }
 0x36e   :  { %1436 = vmatpush3.bf16.msra.mxu0 %v1760_v46 }
 0x36f   :  { %1437 = vmatprep.subr.bf16.mxu0 %v1538_v0 }
 0x372   :  { %1439 = vmatpush3.bf16.msra.mxu0 %v1764_v50 }
 0x373   :  { %1440 = vmatprep.subr.bf16.mxu0 %v1538_v0 }
 0x376   :  { %1442 = vmatpush3.bf16.msra.mxu0 %v1768_v53 }
 0x41c   :  { %v500_v8 = vpop.f32.mrb[4].mxu1 }
 0x41d   :  { %v501_v28 = vadd.f32 %v500_v8, %v1822_v2  ;;  %v1150_v33 = vpop.f32.mrb[5].mxu1 }
 0x41f   :  { %896 = vst [vmem:[%s1850_s3 + $0x8] sm:$0xff] %v501_v28 }
 0x42c   :  { %v680_v37 = vpop.f32.mrb[4].mxu0 }
 0x42d   :  { %v684_v41 = vrot.slane %v680_v37, 4  ;;  %v691_v44 = vmul.f32 %v680_v37, %v680_v37  ;;  %v1204_v47 = vpop.f32.mrb[5].mxu0 }
 0x42f   :  { %v685_v0 = vadd.f32 %v684_v41, %v680_v37  ;;  %v692_v10 = vrot.slane %v691_v44, 4 }
 0x431   :  { %v686_v20 = vrot.slane %v685_v0, 2  ;;  %v693_v29 = vadd.f32 %v692_v10, %v691_v44 }
 0x433   :  { %v687_v38 = vadd.f32 %v686_v20, %v685_v0  ;;  %v694_v42 = vrot.slane %v693_v29, 2 }
 0x435   :  { %v688_v46 = vrot.slane %v687_v38, 1  ;;  %v695_v50 = vadd.f32 %v694_v42, %v693_v29 }
 0x437   :  { %v689_v53 = vadd.f32 %v688_v46, %v687_v38  ;;  %v696_v22 = vrot.slane %v695_v50, 1 }
 0x439   :  { %v690_v31 = vmul.f32 0.125, %v689_v53  ;;  %v697_v34 = vadd.f32 %v696_v22, %v695_v50 }
 0x43b   :  { %v698_v36 = vmul.f32 0.125, %v697_v34  ;;  %v699_v5 = vmul.f32 %v690_v31, %v690_v31 }
 0x43d   :  { %v700_v7 = vsub.f32 %v698_v36, %v699_v5 }
 0x43f   :  { %v701_v13 = vadd.f32 1e-05, %v700_v7 }
 0x441   :  { %1459 = vrsqrt.f32 %v701_v13 }
 0x44b   :  { %v1460_v17 = vpop.eup %1459 }
 0x44c   :  { %v703_v23 = vmul.f32 %v1460_v17, %v1656_v61 }
 0x44e   :  { %v704_v26 = vmul.f32 %v703_v23, %v690_v31  ;;  %v712_v35 = vrot.slane %v703_v23, %v316_v16 }
 0x450   :  { %v706_v32 = vrot.slane %v704_v26, 7  ;;  %v713_v40 = vmul.f32 %v712_v35, %v680_v37 }
 0x452   :  { %v708_v39 = vsub.f32 %v1656_v61, %v706_v32 }
 0x454   :  { %v717_v43 = vrot.slane %v708_v39, %v321_v25 }
 0x456   :  { %v718_v45 = vadd.f32 %v717_v43, %v713_v40 }
 0x458   :  { %1238 = vmatmul.mubr.f32.vlgmr.msra.gmra.mrb[6].mxu1 %v718_v45  ;;  %897 = vst [vmem:[%s1850_s3 + $0x10] sm:$0xff] %v718_v45 }
 0x52b   :  { %v785_v48 = vpop.f32.mrb[6].mxu1 }
 0x52c   :  { %v789_v49 = vrot.slane %v785_v48, 4  ;;  %v796_v51 = vmul.f32 %v785_v48, %v785_v48  ;;  %v1239_v52 = vpop.f32.mrb[7].mxu1 }
 0x52e   :  { %v790_v56 = vadd.f32 %v789_v49, %v785_v48  ;;  %v797_v57 = vrot.slane %v796_v51, 4 }
 0x530   :  { %v791_v58 = vrot.slane %v790_v56, 2  ;;  %v798_v16 = vadd.f32 %v797_v57, %v796_v51 }
 0x532   :  { %v792_v59 = vadd.f32 %v791_v58, %v790_v56  ;;  %v799_v62 = vrot.slane %v798_v16, 2 }
 0x534   :  { %v793_v3 = vrot.slane %v792_v59, 1  ;;  %v800_v4 = vadd.f32 %v799_v62, %v798_v16 }
 0x536   :  { %v794_v6 = vadd.f32 %v793_v3, %v792_v59  ;;  %v801_v25 = vrot.slane %v800_v4, 1 }
 0x538   :  { %v795_v9 = vmul.f32 0.125, %v794_v6  ;;  %v802_v11 = vadd.f32 %v801_v25, %v800_v4 }
 0x53a   :  { %v803_v12 = vmul.f32 0.125, %v802_v11  ;;  %v804_v14 = vmul.f32 %v795_v9, %v795_v9 }
 0x53c   :  { %v805_v15 = vsub.f32 %v803_v12, %v804_v14 }
 0x53e   :  { %v806_v54 = vadd.f32 1e-05, %v805_v15 }
 0x540   :  { %1461 = vrsqrt.f32 %v806_v54 }
 0x54a   :  { %v1462_v18 = vpop.eup %1461 }
 0x54b   :  { %v808_v21 = vmul.f32 %v1462_v18, %v1656_v61 }
 0x54d   :  { %v809_v19 = vmul.f32 %v808_v21, %v795_v9  ;;  %v817_v30 = vrot.slane %v808_v21, %v421_v55 }
 0x54f   :  { %v811_v27 = vrot.slane %v809_v19, 7  ;;  %v818_v1 = vmul.f32 %v817_v30, %v785_v48 }
 0x551   :  { %v813_v24 = vsub.f32 %v1656_v61, %v811_v27 }
 0x553   :  { %v822_v8 = vrot.slane %v813_v24, %v426_v63 }
 0x555   :  { %v823_v28 = vadd.f32 %v822_v8, %v818_v1 }
 0x557   :  { %v824_v33 = vmax.f32 %v823_v28, 0.0 }
 0x559   :  { %1273 = vmatmul.mubr.f32.vlgmr.msra.gmra.mrb[6].mxu0 %v824_v33 }
 0x62c   :  { %v891_v37 = vpop.f32.mrb[6].mxu0 }
 0x62d   :  { %v892_v41 = vadd.f32 %v891_v37, %v1822_v2  ;;  %v1274_v44 = vpop.f32.mrb[7].mxu0 }
 0x62f   :  { %898 = vst [vmem:[%s1850_s3 + $0x18] sm:$0xff] %v892_v41 }
 0x630   :  { %903 = vsyncpa [#allocation3], 1 }
 0x631   :  { %904 = vsyncpa [#allocation5], 1 }

</bundles_post_ra>
